<compile_context>
chip_gen: v5e
topology: v5e:2x2
jax: 0.10.0
libtpu: 0.0.40
codegen_flags: <defaults>
</compile_context>

<pallas_src>
import functools

import jax
import jax.numpy as jnp
import numpy as np
from jax.experimental import pallas as pl
from jax.experimental.pallas import tpu as pltpu


def _round_up(x, m):
    return (x + m - 1) // m * m


def _pwff_kernel(x_ref, w1_ref, b1_ref, w2_ref, b2_ref, gamma_ref, beta_ref,
                 out_ref, *, d_in_true):
    """One row tile. x_ref: (tm, 2*d_in_p) lane-packed [x_real | x_phase]."""
    d_in_p = x_ref.shape[1] // 2

    x = x_ref[...]
    x_f32 = x.astype(jnp.float32)                      # residual path stays f32

    # ---- layer 1: one MXU matmul; result is already lane-packed [h_real | h_phase] ----
    h = jnp.dot(x.astype(jnp.bfloat16), w1_ref[...],
                preferred_element_type=jnp.float32)    # (tm, 2*d_hid_p)
    h = jnp.maximum(h + b1_ref[...], 0.0)              # folded bias [b1r-b1p | b1r+b1p]

    # ---- layer 2: one MXU matmul; result is lane-packed [o_real | o_phase] ----
    o = jnp.dot(h.astype(jnp.bfloat16), w2_ref[...],
                preferred_element_type=jnp.float32)    # (tm, 2*d_in_p)
    o = o + b2_ref[...]

    # TODO(synk): dropout omitted (eval-mode semantics); training-mode dropout would use
    # pltpu.prng_seed / pltpu.stateful_bernoulli.

    y = o + x_f32                                      # residual, still lane-packed

    gamma = gamma_ref[...]                             # (1, d_in_p), implicit sublane broadcast
    beta = beta_ref[...]
    inv_n = 1.0 / d_in_true

    def layer_norm(v):
        # Padded feature lanes (if any) hold exact zeros, so full-lane sums equal sums over the
        # true d_in features; divide by the true count so padding does not skew mean/variance.
        mu = jnp.sum(v, axis=-1, keepdims=True) * inv_n
        var = jnp.maximum(jnp.sum(v * v, axis=-1, keepdims=True) * inv_n - mu * mu, 0.0)
        return (v - mu) * jax.lax.rsqrt(var + 1e-5) * gamma + beta

    # Two lane-aligned half stores (d_in_p % 128 == 0): unmasked vst, no lane-concat copy.
    out_ref[:, :d_in_p] = layer_norm(y[:, :d_in_p]).astype(out_ref.dtype)
    out_ref[:, d_in_p:] = layer_norm(y[:, d_in_p:]).astype(out_ref.dtype)


def _const_spec(shape):
    # Grid-invariant operand (weights / biases / LN params): constant index_map.
    # TODO(synk): single-buffer these (pipeline_mode=pl.Buffered(1)) once that path is verified
    # on the target jax build; saves one weight copy of VMEM (matters most on v7x's 64 MiB).
    return pl.BlockSpec(shape, lambda i: (0, 0))


@functools.partial(jax.jit, static_argnames=("tm",))
def positionwise_feed_forward(x_real, x_phase, params, *, tm=512):
    """x_real, x_phase: (B, L, d_in). Returns (out_real, out_phase), eval-mode semantics."""
    B, L, d_in = x_real.shape
    d_hid = params["w1r"].shape[1]
    rows = B * L

    d_in_p = _round_up(d_in, 128)
    d_hid_p = _round_up(d_hid, 128)

    def pad2(a, r, c):
        return jnp.pad(a, ((0, r - a.shape[0]), (0, c - a.shape[1])))

    # --- fold parameters into the block-matrix ("complex-as-real") form, once, inside jit ---
    w1r = pad2(params["w1r"], d_in_p, d_hid_p)
    w1p = pad2(params["w1p"], d_in_p, d_hid_p)
    w2r = pad2(params["w2r"], d_hid_p, d_in_p)
    w2p = pad2(params["w2p"], d_hid_p, d_in_p)
    w1 = jnp.concatenate(
        [jnp.concatenate([w1r, w1p], axis=1),
         jnp.concatenate([-w1p, w1r], axis=1)], axis=0).astype(jnp.bfloat16)   # (2*d_in_p, 2*d_hid_p)
    w2 = jnp.concatenate(
        [jnp.concatenate([w2r, w2p], axis=1),
         jnp.concatenate([-w2p, w2r], axis=1)], axis=0).astype(jnp.bfloat16)   # (2*d_hid_p, 2*d_in_p)

    b1r = pad2(params["b1r"], 1, d_hid_p)
    b1p = pad2(params["b1p"], 1, d_hid_p)
    b2r = pad2(params["b2r"], 1, d_in_p)
    b2p = pad2(params["b2p"], 1, d_in_p)
    b1 = jnp.concatenate([b1r - b1p, b1r + b1p], axis=1).astype(jnp.float32)   # (1, 2*d_hid_p)
    b2 = jnp.concatenate([b2r - b2p, b2r + b2p], axis=1).astype(jnp.float32)   # (1, 2*d_in_p)
    gamma = pad2(params["gamma"], 1, d_in_p).astype(jnp.float32)
    beta = pad2(params["beta"], 1, d_in_p).astype(jnp.float32)

    # --- pack inputs lane-wise: one DMA tile per grid step, already the layer-1 operand ---
    xr2 = x_real.reshape(rows, d_in)
    xp2 = x_phase.reshape(rows, d_in)
    if d_in_p != d_in:
        fpad = ((0, 0), (0, d_in_p - d_in))
        xr2 = jnp.pad(xr2, fpad)
        xp2 = jnp.pad(xp2, fpad)
    x_packed = jnp.concatenate([xr2, xp2], axis=-1)            # (rows, 2*d_in_p)

    # --- generation-aware VMEM budget (don't cap at physical VMEM; leave headroom) ---
    try:
        vmem_cap = int(pltpu.get_tpu_info().vmem_capacity_bytes)
    except Exception:
        vmem_cap = 128 << 20
    headroom = int(vmem_cap * 0.8)          # ~51 MiB on v7x, ~102 MiB on v5e/v6e

    in_bytes = jnp.dtype(x_real.dtype).itemsize
    w_elems = 8 * d_in_p * d_hid_p                               # W1 + W2 elements
    w_bytes = 2 * w_elems * 2                                    # bf16, double-buffered (worst case)
    small_bytes = (2 * d_hid_p + 4 * d_in_p) * 4                 # B1, B2, gamma, beta

    def tile_bytes(t):
        io = 2 * (2 * t * 2 * d_in_p * in_bytes)                 # x + out tiles, double-buffered
        interm = t * 2 * d_hid_p * (4 + 2) + 4 * t * 2 * d_in_p * 4   # h f32+bf16, o/y/x_f32/LN temps
        return w_bytes + small_bytes + io + int(interm * 1.25) + (2 << 20)

    # --- row tiling: biggest tile that fits, multiple of 8, and >= 2 grid steps (megacore) ---
    rows_p = _round_up(rows, 8)
    tm_eff = max(8, (min(tm, rows_p) // 8) * 8)
    min_steps = min(4, max(1, rows_p // 8))          # >= 2 steps keeps both v7x TCs busy
    while tm_eff > 8 and pl.cdiv(rows_p, tm_eff) < min_steps:
        tm_eff = max(8, ((tm_eff // 2) // 8) * 8)
    while tm_eff > 8 and tile_bytes(tm_eff) > headroom:
        # TODO(synk): for very large d_hid on v7x (64 MiB VMEM) a second "arbitrary" grid axis
        # over d_hid with an f32 accumulator would keep tm large instead of shrinking it here.
        tm_eff = max(8, ((tm_eff // 2) // 8) * 8)
    vmem_limit = int(min(max(tile_bytes(tm_eff), 32 << 20), headroom))

    rows_pad = _round_up(rows_p, tm_eff)
    if rows_pad != rows:
        x_packed = jnp.pad(x_packed, ((0, rows_pad - rows), (0, 0)))

    row_spec = pl.BlockSpec((tm_eff, 2 * d_in_p), lambda i: (i, 0))
    in_specs = [
        row_spec,                                    # packed [x_real | x_phase] tile
        _const_spec((2 * d_in_p, 2 * d_hid_p)),      # W1 block matrix (bf16)
        _const_spec((1, 2 * d_hid_p)),               # folded b1
        _const_spec((2 * d_hid_p, 2 * d_in_p)),      # W2 block matrix (bf16)
        _const_spec((1, 2 * d_in_p)),                # folded b2
        _const_spec((1, d_in_p)),                    # gamma
        _const_spec((1, d_in_p)),                    # beta
    ]

    out = pl.pallas_call(
        functools.partial(_pwff_kernel, d_in_true=d_in),
        out_shape=jax.ShapeDtypeStruct((rows_pad, 2 * d_in_p), x_real.dtype),
        grid_spec=pltpu.PrefetchScalarGridSpec(
            num_scalar_prefetch=0,
            grid=(rows_pad // tm_eff,),
            in_specs=in_specs,
            out_specs=row_spec,
        ),
        compiler_params=pltpu.CompilerParams(
            dimension_semantics=("parallel",),
            vmem_limit_bytes=vmem_limit),
    )(x_packed, w1, b1, w2, b2, gamma, beta)

    out_real = out[:rows, :d_in].reshape(B, L, d_in)
    out_phase = out[:rows, d_in_p:d_in_p + d_in].reshape(B, L, d_in)
    return out_real, out_phase


def init_params(key, d_in, d_hid):
    """Deterministic synthetic params. Conv1d(k=1) weights stored pre-transposed
    as (in_features, out_features) so the kernel does x @ W + b."""
    ks = jax.random.split(key, 8)
    s1 = 1.0 / np.sqrt(d_in)
    s2 = 1.0 / np.sqrt(d_hid)
    return {
        "w1r": jax.random.uniform(ks[0], (d_in, d_hid), jnp.float32, -s1, s1),
        "w1p": jax.random.uniform(ks[1], (d_in, d_hid), jnp.float32, -s1, s1),
        "b1r": jax.random.uniform(ks[2], (1, d_hid), jnp.float32, -s1, s1),
        "b1p": jax.random.uniform(ks[3], (1, d_hid), jnp.float32, -s1, s1),
        "w2r": jax.random.uniform(ks[4], (d_hid, d_in), jnp.float32, -s2, s2),
        "w2p": jax.random.uniform(ks[5], (d_hid, d_in), jnp.float32, -s2, s2),
        "b2r": jax.random.uniform(ks[6], (1, d_in), jnp.float32, -s2, s2),
        "b2p": jax.random.uniform(ks[7], (1, d_in), jnp.float32, -s2, s2),
        "gamma": jnp.ones((1, d_in), jnp.float32),
        "beta": jnp.zeros((1, d_in), jnp.float32),
    }


def _reference(x_real, x_phase, p):
    """Plain-JAX f32 reference mirroring the PyTorch forward (eval mode)."""
    def lin(x, w, b):
        return x @ w + b
    h_r = jax.nn.relu(lin(x_real, p["w1r"], p["b1r"]) - lin(x_phase, p["w1p"], p["b1p"]))
    h_p = jax.nn.relu(lin(x_phase, p["w1r"], p["b1r"]) + lin(x_real, p["w1p"], p["b1p"]))
    o_r = lin(h_r, p["w2r"], p["b2r"]) - lin(h_p, p["w2p"], p["b2p"])
    o_p = lin(h_p, p["w2r"], p["b2r"]) + lin(h_r, p["w2p"], p["b2p"])

    def ln(y):
        mu = jnp.mean(y, axis=-1, keepdims=True)
        var = jnp.mean((y - mu) ** 2, axis=-1, keepdims=True)
        return (y - mu) * jax.lax.rsqrt(var + 1e-5) * p["gamma"] + p["beta"]

    return ln(o_r + x_real), ln(o_p + x_phase)


if __name__ == "__main__":
    B, L, d_in, d_hid = 2, 8, 32, 64
    key = jax.random.PRNGKey(0)
    k_xr, k_xp, k_p = jax.random.split(key, 3)

    x_real = jax.random.normal(k_xr, (B, L, d_in), jnp.float32)
    x_phase = jax.random.normal(k_xp, (B, L, d_in), jnp.float32)
    params = init_params(k_p, d_in, d_hid)

    out_real, out_phase = positionwise_feed_forward(x_real, x_phase, params)
    jax.block_until_ready((out_real, out_phase))

    # bf16 MXU operands (f32 accumulation) -> loosened tolerance vs the f32 reference.
    ref_real, ref_phase = _reference(x_real, x_phase, params)
    np.testing.assert_allclose(np.asarray(out_real), np.asarray(ref_real),
                               rtol=2e-2, atol=2e-2)
    np.testing.assert_allclose(np.asarray(out_phase), np.asarray(ref_phase),
                               rtol=2e-2, atol=2e-2)

    print("KERNEL_OK")
</pallas_src>

<mosaic_0001>
module attributes {stable_mosaic.version = 11 : i64} {
  func.func @_pwff_kernel(%arg0: i32, %arg1: memref<8x256xf32, #tpu.memory_space<vmem>>, %arg2: memref<256x256xbf16, #tpu.memory_space<vmem>>, %arg3: memref<1x256xf32, #tpu.memory_space<vmem>>, %arg4: memref<256x256xbf16, #tpu.memory_space<vmem>>, %arg5: memref<1x256xf32, #tpu.memory_space<vmem>>, %arg6: memref<1x128xf32, #tpu.memory_space<vmem>>, %arg7: memref<1x128xf32, #tpu.memory_space<vmem>>, %arg8: memref<8x256xf32, #tpu.memory_space<vmem>>) attributes {dimension_semantics = [#tpu.dimension_semantics<parallel>], iteration_bounds = array<i64: 2>, scalar_prefetch = 0 : i64, scratch_operands = 0 : i64, tpu.core_type = #tpu.core_type<tc>, window_params = [{transform_indices = @transform_0, window_bounds = array<i64: 8, 256>}, {pipeline_mode = #tpu.pipeline_mode<synchronous>, transform_indices = @transform_1, window_bounds = array<i64: 256, 256>}, {pipeline_mode = #tpu.pipeline_mode<synchronous>, transform_indices = @transform_2, window_bounds = array<i64: 1, 256>}, {pipeline_mode = #tpu.pipeline_mode<synchronous>, transform_indices = @transform_3, window_bounds = array<i64: 256, 256>}, {pipeline_mode = #tpu.pipeline_mode<synchronous>, transform_indices = @transform_4, window_bounds = array<i64: 1, 256>}, {pipeline_mode = #tpu.pipeline_mode<synchronous>, transform_indices = @transform_5, window_bounds = array<i64: 1, 128>}, {pipeline_mode = #tpu.pipeline_mode<synchronous>, transform_indices = @transform_6, window_bounds = array<i64: 1, 128>}, {transform_indices = @transform_7, window_bounds = array<i64: 8, 256>}]} {
    %c0 = arith.constant 0 : index
    %c0_0 = arith.constant 0 : index
    %0 = vector.load %arg1[%c0, %c0_0] : memref<8x256xf32, #tpu.memory_space<vmem>>, vector<8x256xf32>
    %1 = arith.truncf %0 : vector<8x256xf32> to vector<8x256xbf16>
    %c0_1 = arith.constant 0 : index
    %c0_2 = arith.constant 0 : index
    %2 = vector.load %arg2[%c0_1, %c0_2] : memref<256x256xbf16, #tpu.memory_space<vmem>>, vector<256x256xbf16>
    %cst = arith.constant dense<0.000000e+00> : vector<8x256xf32>
    %3 = tpu.matmul %1, %2, %cst {dimension_numbers = #tpu.dot_dimension_numbers<[1], [0], [0], [1], [0, 0, 1, 1], [], []>} : vector<8x256xbf16>, vector<256x256xbf16>, vector<8x256xf32> -> vector<8x256xf32>
    %c0_3 = arith.constant 0 : index
    %c0_4 = arith.constant 0 : index
    %4 = vector.load %arg3[%c0_3, %c0_4] : memref<1x256xf32, #tpu.memory_space<vmem>>, vector<1x256xf32>
    %5 = vector.broadcast %4 : vector<1x256xf32> to vector<8x256xf32>
    %6 = arith.addf %3, %5 : vector<8x256xf32>
    %cst_5 = arith.constant 0.000000e+00 : f32
    %7 = vector.broadcast %cst_5 : f32 to vector<8x256xf32>
    %8 = arith.maximumf %6, %7 : vector<8x256xf32>
    %9 = arith.truncf %8 : vector<8x256xf32> to vector<8x256xbf16>
    %c0_6 = arith.constant 0 : index
    %c0_7 = arith.constant 0 : index
    %10 = vector.load %arg4[%c0_6, %c0_7] : memref<256x256xbf16, #tpu.memory_space<vmem>>, vector<256x256xbf16>
    %cst_8 = arith.constant dense<0.000000e+00> : vector<8x256xf32>
    %11 = tpu.matmul %9, %10, %cst_8 {dimension_numbers = #tpu.dot_dimension_numbers<[1], [0], [0], [1], [0, 0, 1, 1], [], []>} : vector<8x256xbf16>, vector<256x256xbf16>, vector<8x256xf32> -> vector<8x256xf32>
    %c0_9 = arith.constant 0 : index
    %c0_10 = arith.constant 0 : index
    %12 = vector.load %arg5[%c0_9, %c0_10] : memref<1x256xf32, #tpu.memory_space<vmem>>, vector<1x256xf32>
    %13 = vector.broadcast %12 : vector<1x256xf32> to vector<8x256xf32>
    %14 = arith.addf %11, %13 : vector<8x256xf32>
    %15 = arith.addf %14, %0 : vector<8x256xf32>
    %c0_11 = arith.constant 0 : index
    %c0_12 = arith.constant 0 : index
    %16 = vector.load %arg6[%c0_11, %c0_12] : memref<1x128xf32, #tpu.memory_space<vmem>>, vector<1x128xf32>
    %c0_13 = arith.constant 0 : index
    %c0_14 = arith.constant 0 : index
    %17 = vector.load %arg7[%c0_13, %c0_14] : memref<1x128xf32, #tpu.memory_space<vmem>>, vector<1x128xf32>
    %18 = vector.extract_strided_slice %15 {offsets = [0, 0], sizes = [8, 128], strides = [1, 1]} : vector<8x256xf32> to vector<8x128xf32>
    %cst_15 = arith.constant dense<0.000000e+00> : vector<8xf32>
    %19 = vector.multi_reduction <add>, %18, %cst_15 [1] : vector<8x128xf32> to vector<8xf32>
    %20 = vector.shape_cast %19 : vector<8xf32> to vector<8x1xf32>
    %cst_16 = arith.constant 3.125000e-02 : f32
    %21 = vector.broadcast %cst_16 : f32 to vector<8x1xf32>
    %22 = arith.mulf %20, %21 : vector<8x1xf32>
    %23 = arith.mulf %18, %18 : vector<8x128xf32>
    %cst_17 = arith.constant dense<0.000000e+00> : vector<8xf32>
    %24 = vector.multi_reduction <add>, %23, %cst_17 [1] : vector<8x128xf32> to vector<8xf32>
    %25 = vector.shape_cast %24 : vector<8xf32> to vector<8x1xf32>
    %cst_18 = arith.constant 3.125000e-02 : f32
    %26 = vector.broadcast %cst_18 : f32 to vector<8x1xf32>
    %27 = arith.mulf %25, %26 : vector<8x1xf32>
    %28 = arith.mulf %22, %22 : vector<8x1xf32>
    %29 = arith.subf %27, %28 : vector<8x1xf32>
    %cst_19 = arith.constant 0.000000e+00 : f32
    %30 = vector.broadcast %cst_19 : f32 to vector<8x1xf32>
    %31 = arith.maximumf %29, %30 : vector<8x1xf32>
    %32 = vector.broadcast %22 : vector<8x1xf32> to vector<8x128xf32>
    %33 = arith.subf %18, %32 : vector<8x128xf32>
    %cst_20 = arith.constant 9.99999974E-6 : f32
    %34 = vector.broadcast %cst_20 : f32 to vector<8x1xf32>
    %35 = arith.addf %31, %34 : vector<8x1xf32>
    %36 = math.rsqrt %35 : vector<8x1xf32>
    %37 = vector.broadcast %36 : vector<8x1xf32> to vector<8x128xf32>
    %38 = arith.mulf %33, %37 : vector<8x128xf32>
    %39 = vector.broadcast %16 : vector<1x128xf32> to vector<8x128xf32>
    %40 = arith.mulf %38, %39 : vector<8x128xf32>
    %41 = vector.broadcast %17 : vector<1x128xf32> to vector<8x128xf32>
    %42 = arith.addf %40, %41 : vector<8x128xf32>
    %c0_21 = arith.constant 0 : index
    %c0_22 = arith.constant 0 : index
    %43 = vector.load %arg8[%c0_21, %c0_22] : memref<8x256xf32, #tpu.memory_space<vmem>>, vector<8x128xf32>
    tpu.vector_store %arg8[%c0_21, %c0_22], %42 {strides = array<i32>} : memref<8x256xf32, #tpu.memory_space<vmem>>, vector<8x128xf32>,
    %44 = vector.extract_strided_slice %15 {offsets = [0, 128], sizes = [8, 128], strides = [1, 1]} : vector<8x256xf32> to vector<8x128xf32>
    %cst_23 = arith.constant dense<0.000000e+00> : vector<8xf32>
    %45 = vector.multi_reduction <add>, %44, %cst_23 [1] : vector<8x128xf32> to vector<8xf32>
    %46 = vector.shape_cast %45 : vector<8xf32> to vector<8x1xf32>
    %cst_24 = arith.constant 3.125000e-02 : f32
    %47 = vector.broadcast %cst_24 : f32 to vector<8x1xf32>
    %48 = arith.mulf %46, %47 : vector<8x1xf32>
    %49 = arith.mulf %44, %44 : vector<8x128xf32>
    %cst_25 = arith.constant dense<0.000000e+00> : vector<8xf32>
    %50 = vector.multi_reduction <add>, %49, %cst_25 [1] : vector<8x128xf32> to vector<8xf32>
    %51 = vector.shape_cast %50 : vector<8xf32> to vector<8x1xf32>
    %cst_26 = arith.constant 3.125000e-02 : f32
    %52 = vector.broadcast %cst_26 : f32 to vector<8x1xf32>
    %53 = arith.mulf %51, %52 : vector<8x1xf32>
    %54 = arith.mulf %48, %48 : vector<8x1xf32>
    %55 = arith.subf %53, %54 : vector<8x1xf32>
    %cst_27 = arith.constant 0.000000e+00 : f32
    %56 = vector.broadcast %cst_27 : f32 to vector<8x1xf32>
    %57 = arith.maximumf %55, %56 : vector<8x1xf32>
    %58 = vector.broadcast %48 : vector<8x1xf32> to vector<8x128xf32>
    %59 = arith.subf %44, %58 : vector<8x128xf32>
    %cst_28 = arith.constant 9.99999974E-6 : f32
    %60 = vector.broadcast %cst_28 : f32 to vector<8x1xf32>
    %61 = arith.addf %57, %60 : vector<8x1xf32>
    %62 = math.rsqrt %61 : vector<8x1xf32>
    %63 = vector.broadcast %62 : vector<8x1xf32> to vector<8x128xf32>
    %64 = arith.mulf %59, %63 : vector<8x128xf32>
    %65 = vector.broadcast %16 : vector<1x128xf32> to vector<8x128xf32>
    %66 = arith.mulf %64, %65 : vector<8x128xf32>
    %67 = vector.broadcast %17 : vector<1x128xf32> to vector<8x128xf32>
    %68 = arith.addf %66, %67 : vector<8x128xf32>
    %c0_29 = arith.constant 0 : index
    %c128 = arith.constant 128 : index
    %69 = vector.load %arg8[%c0_29, %c128] : memref<8x256xf32, #tpu.memory_space<vmem>>, vector<8x128xf32>
    tpu.vector_store %arg8[%c0_29, %c128], %68 {strides = array<i32>} : memref<8x256xf32, #tpu.memory_space<vmem>>, vector<8x128xf32>,
    return
  }
  func.func @transform_0(%arg0: i32) -> (i32, i32) {
    %c0_i32 = arith.constant 0 : i32
    %c0_i32_0 = arith.constant 0 : i32
    return %arg0, %c0_i32 : i32, i32
  }
  func.func @transform_1(%arg0: i32) -> (i32, i32) {
    %c0_i32 = arith.constant 0 : i32
    %c0_i32_0 = arith.constant 0 : i32
    %c0_i32_1 = arith.constant 0 : i32
    return %c0_i32, %c0_i32_0 : i32, i32
  }
  func.func @transform_2(%arg0: i32) -> (i32, i32) {
    %c0_i32 = arith.constant 0 : i32
    %c0_i32_0 = arith.constant 0 : i32
    %c0_i32_1 = arith.constant 0 : i32
    return %c0_i32, %c0_i32_0 : i32, i32
  }
  func.func @transform_3(%arg0: i32) -> (i32, i32) {
    %c0_i32 = arith.constant 0 : i32
    %c0_i32_0 = arith.constant 0 : i32
    %c0_i32_1 = arith.constant 0 : i32
    return %c0_i32, %c0_i32_0 : i32, i32
  }
  func.func @transform_4(%arg0: i32) -> (i32, i32) {
    %c0_i32 = arith.constant 0 : i32
    %c0_i32_0 = arith.constant 0 : i32
    %c0_i32_1 = arith.constant 0 : i32
    return %c0_i32, %c0_i32_0 : i32, i32
  }
  func.func @transform_5(%arg0: i32) -> (i32, i32) {
    %c0_i32 = arith.constant 0 : i32
    %c0_i32_0 = arith.constant 0 : i32
    %c0_i32_1 = arith.constant 0 : i32
    return %c0_i32, %c0_i32_0 : i32, i32
  }
  func.func @transform_6(%arg0: i32) -> (i32, i32) {
    %c0_i32 = arith.constant 0 : i32
    %c0_i32_0 = arith.constant 0 : i32
    %c0_i32_1 = arith.constant 0 : i32
    return %c0_i32, %c0_i32_0 : i32, i32
  }
  func.func @transform_7(%arg0: i32) -> (i32, i32) {
    %c0_i32 = arith.constant 0 : i32
    %c0_i32_0 = arith.constant 0 : i32
    return %arg0, %c0_i32 : i32, i32
  }
}

</mosaic_0001>

<bundles_post_ra>
// kernel: positionwise_feed_forward.1
= control target key start
LH: loop header
LB: loop body
LE: loop exit
PB: predicated region body
PF: predicated region fallthrough
CT: control target
= control target key end

     0   :  { %s1299_s24 = smov 0   ;;  %s1733_s0 = inlined_call_operand.vmem [shape: f32[16,256], index: 0, kind: input, shape index: {}]   ;;  %s1734_s1 = inlined_call_operand.vmem [shape: bf16[256,256], index: 1, kind: input, shape index: {}]   ;;  %s1735_s2 = inlined_call_operand.vmem [shape: f32[1,256], index: 2, kind: input, shape index: {}]   ;;  %s1736_s3 = inlined_call_operand.vmem [shape: bf16[256,256], index: 3, kind: input, shape index: {}]   ;;  %s1737_s4 = inlined_call_operand.vmem [shape: f32[1,256], index: 4, kind: input, shape index: {}]   ;;  %s1738_s5 = inlined_call_operand.vmem [shape: f32[1,128], index: 5, kind: input, shape index: {}]   ;;  %s1739_s6 = inlined_call_operand.vmem [shape: f32[1,128], index: 6, kind: input, shape index: {}]   ;;  %s1740_s7 = inlined_call_operand.vmem [shape: f32[16,256], index: 7, kind: output, shape index: {}]  }
   0x1 LB: > { %s904_s25 = sadd.s32 4294967295, %s1257_s24   ;;  %p908_p0 = scmp.ge.s32.totalorder %s1257_s24, 1  ;;  %s1257_s24 = sphi %s1299_s24, %s17_s24  }
   0x2   : > { %p237_p1 = scmp.lt.s32.totalorder %s1257_s24, 3 }
   0x4   : > { %p238_p2 = pnand %p908_p0, %p237_p1 }
   0x5   : > { %p269_p3 = scmp.lt.s32.totalorder (!%p238_p2), %s904_s25, 1 }
   0x6   : > { %241 = sbr.rel (%p238_p2) target bundleno = 477 (0x1dd), region = 48 }
   0xb   : > { %v971_v0 = vld [vmem:[%s1734_s1 + $0x70] sm:$0xf]  ;;  %v1188_v1 = vld [vmem:[%s1734_s1 + $0x74] sm:$0xf0]  ;;  %v1187_v5 = vld [vmem:[%s1734_s1 + $0x74] sm:$0xf] }
   0xc   : > { %v1035_v2 = vld [vmem:[%s1734_s1 + $0xf0] sm:$0xf]  ;;  %v972_v3 = vor.u32 %v1188_v1, %v971_v0  ;;  %v1204_v4 = vld [vmem:[%s1734_s1 + $0xf4] sm:$0xf0]  ;;  %v973_v6 = vld [vmem:[%s1734_s1 + $0x78] sm:$0xf0] }
   0xd   : > { %v1036_v7 = vor.u32 %v1204_v4, %v1035_v2  ;;  %v976_v8 = vor.u32 %v1187_v5, %v973_v6  ;;  %v1203_v9 = vld [vmem:[%s1734_s1 + $0xf4] sm:$0xf]  ;;  %v1037_v10 = vld [vmem:[%s1734_s1 + $0xf8] sm:$0xf0]  ;;  %v963_v11 = vld [vmem:[%s1734_s1 + $0x60] sm:$0xf] }
   0xe   : > { %481 = vmatpush.bf16.msra.mxu0 %v972_v3  ;;  %v1040_v12 = vor.u32 %v1203_v9, %v1037_v10  ;;  %v1186_v13 = vld [vmem:[%s1734_s1 + $0x64] sm:$0xf0]  ;;  %v1027_v14 = vld [vmem:[%s1734_s1 + $0xe0] sm:$0xf]  ;;  %v1185_v18 = vld [vmem:[%s1734_s1 + $0x64] sm:$0xf] }
   0xf   : > { %v1202_v15 = vld [vmem:[%s1734_s1 + $0xe4] sm:$0xf0]  ;;  %494 = vmatpush.bf16.msra.mxu1 %v1036_v7  ;;  %507 = vmatpush.bf16.msra.mxu2 %v976_v8  ;;  %v964_v16 = vor.u32 %v1186_v13, %v963_v11  ;;  %v965_v19 = vld [vmem:[%s1734_s1 + $0x68] sm:$0xf0]  ;;  %v1201_v20 = vld [vmem:[%s1734_s1 + $0xe4] sm:$0xf] }
  0x10   : > { %v1028_v17 = vor.u32 %v1202_v15, %v1027_v14  ;;  %520 = vmatpush.bf16.msra.mxu3 %v1040_v12  ;;  %v968_v21 = vor.u32 %v1185_v18, %v965_v19  ;;  %v1029_v22 = vld [vmem:[%s1734_s1 + $0xe8] sm:$0xf0]  ;;  %v955_v23 = vld [vmem:[%s1734_s1 + $0x50] sm:$0xf]  ;;  %v1184_v24 = vld [vmem:[%s1734_s1 + $0x54] sm:$0xf0] }
  0x11   : > { %v1032_v25 = vor.u32 %v1201_v20, %v1029_v22  ;;  %v1019_v26 = vld [vmem:[%s1734_s1 + $0xd0] sm:$0xf]  ;;  %v1200_v27 = vld [vmem:[%s1734_s1 + $0xd4] sm:$0xf0]  ;;  %v1183_v28 = vld [vmem:[%s1734_s1 + $0x54] sm:$0xf]  ;;  %v956_v29 = vor.u32 %v1184_v24, %v955_v23 }
  0x12   : > { %482 = vmatpush.bf16.msra.mxu0 %v964_v16  ;;  %v957_v30 = vld [vmem:[%s1734_s1 + $0x58] sm:$0xf0]  ;;  %v1199_v31 = vld [vmem:[%s1734_s1 + $0xd4] sm:$0xf]  ;;  %v1020_v33 = vor.u32 %v1200_v27, %v1019_v26  ;;  %v947_v35 = vld [vmem:[%s1734_s1 + $0x40] sm:$0xf] }
  0x13   : > { %v1021_v32 = vld [vmem:[%s1734_s1 + $0xd8] sm:$0xf0]  ;;  %495 = vmatpush.bf16.msra.mxu1 %v1028_v17  ;;  %508 = vmatpush.bf16.msra.mxu2 %v968_v21  ;;  %v960_v34 = vor.u32 %v1183_v28, %v957_v30  ;;  %v1182_v36 = vld [vmem:[%s1734_s1 + $0x44] sm:$0xf0]  ;;  %v1011_v37 = vld [vmem:[%s1734_s1 + $0xc0] sm:$0xf] }
  0x14   : > { %521 = vmatpush.bf16.msra.mxu3 %v1032_v25  ;;  %v1024_v38 = vor.u32 %v1199_v31, %v1021_v32  ;;  %v1198_v39 = vld [vmem:[%s1734_s1 + $0xc4] sm:$0xf0]  ;;  %v1181_v40 = vld [vmem:[%s1734_s1 + $0x44] sm:$0xf]  ;;  %v949_v41 = vld [vmem:[%s1734_s1 + $0x48] sm:$0xf0]  ;;  %v948_v44 = vor.u32 %v1182_v36, %v947_v35 }
  0x15   : > { %v1197_v42 = vld [vmem:[%s1734_s1 + $0xc4] sm:$0xf]  ;;  %v1013_v43 = vld [vmem:[%s1734_s1 + $0xc8] sm:$0xf0]  ;;  %v1012_v45 = vor.u32 %v1198_v39, %v1011_v37  ;;  %v952_v46 = vor.u32 %v1181_v40, %v949_v41  ;;  %v939_v47 = vld [vmem:[%s1734_s1 + $0x30] sm:$0xf] }
  0x16   : > { %483 = vmatpush.bf16.msra.mxu0 %v956_v29  ;;  %v1180_v48 = vld [vmem:[%s1734_s1 + $0x34] sm:$0xf0]  ;;  %v1003_v49 = vld [vmem:[%s1734_s1 + $0xb0] sm:$0xf]  ;;  %v1016_v50 = vor.u32 %v1197_v42, %v1013_v43  ;;  %v1179_v52 = vld [vmem:[%s1734_s1 + $0x34] sm:$0xf] }
  0x17   : > { %496 = vmatpush.bf16.msra.mxu1 %v1020_v33  ;;  %509 = vmatpush.bf16.msra.mxu2 %v960_v34  ;;  %v1196_v51 = vld [vmem:[%s1734_s1 + $0xb4] sm:$0xf0]  ;;  %v941_v53 = vld [vmem:[%s1734_s1 + $0x38] sm:$0xf0]  ;;  %v1195_v54 = vld [vmem:[%s1734_s1 + $0xb4] sm:$0xf]  ;;  %v940_v56 = vor.u32 %v1180_v48, %v939_v47 }
  0x18   : > { %522 = vmatpush.bf16.msra.mxu3 %v1024_v38  ;;  %v1005_v55 = vld [vmem:[%s1734_s1 + $0xb8] sm:$0xf0]  ;;  %v1004_v57 = vor.u32 %v1196_v51, %v1003_v49  ;;  %v944_v58 = vor.u32 %v1179_v52, %v941_v53  ;;  %v931_v59 = vld [vmem:[%s1734_s1 + $0x20] sm:$0xf]  ;;  %v1178_v60 = vld [vmem:[%s1734_s1 + $0x24] sm:$0xf0] }
  0x19   : > { %v995_v61 = vld [vmem:[%s1734_s1 + $0xa0] sm:$0xf]  ;;  %v1008_v62 = vor.u32 %v1195_v54, %v1005_v55  ;;  %v1194_v63 = vld [vmem:[%s1734_s1 + $0xa4] sm:$0xf0]  ;;  %v1177_v0 = vld [vmem:[%s1734_s1 + $0x24] sm:$0xf]  ;;  %v932_v4 = vor.u32 %v1178_v60, %v931_v59 }
  0x1a   : > { %484 = vmatpush.bf16.msra.mxu0 %v948_v44  ;;  %v933_v1 = vld [vmem:[%s1734_s1 + $0x28] sm:$0xf0]  ;;  %v1193_v2 = vld [vmem:[%s1734_s1 + $0xa4] sm:$0xf]  ;;  %v923_v5 = vld [vmem:[%s1734_s1 + $0x10] sm:$0xf]  ;;  %v996_v6 = vor.u32 %v1194_v63, %v995_v61 }
  0x1b   : > { %497 = vmatpush.bf16.msra.mxu1 %v1012_v45  ;;  %510 = vmatpush.bf16.msra.mxu2 %v952_v46  ;;  %v997_v3 = vld [vmem:[%s1734_s1 + $0xa8] sm:$0xf0]  ;;  %v936_v7 = vor.u32 %v1177_v0, %v933_v1  ;;  %v1176_v8 = vld [vmem:[%s1734_s1 + $0x14] sm:$0xf0]  ;;  %v987_v9 = vld [vmem:[%s1734_s1 + $0x90] sm:$0xf] }
  0x1c   : > { %523 = vmatpush.bf16.msra.mxu3 %v1016_v50  ;;  %v1192_v10 = vld [vmem:[%s1734_s1 + $0x94] sm:$0xf0]  ;;  %v1000_v11 = vor.u32 %v1193_v2, %v997_v3  ;;  %v1175_v12 = vld [vmem:[%s1734_s1 + $0x14] sm:$0xf]  ;;  %v925_v13 = vld [vmem:[%s1734_s1 + $0x18] sm:$0xf0]  ;;  %v924_v16 = vor.u32 %v1176_v8, %v923_v5 }
  0x1d   : > { %v1191_v14 = vld [vmem:[%s1734_s1 + $0x94] sm:$0xf]  ;;  %v989_v15 = vld [vmem:[%s1734_s1 + $0x98] sm:$0xf0]  ;;  %v915_v17 = vld [vmem:[%s1734_s1] sm:$0xf]  ;;  %v988_v19 = vor.u32 %v1192_v10, %v987_v9  ;;  %v928_v20 = vor.u32 %v1175_v12, %v925_v13 }
  0x1e   : > { %485 = vmatpush.bf16.msra.mxu0 %v940_v56  ;;  %v1174_v18 = vld [vmem:[%s1734_s1 + $0x4] sm:$0xf0]  ;;  %s1742_s25 = smov (!%p269_p3, %s904_s25), 1  ;;  %v979_v21 = vld [vmem:[%s1734_s1 + $0x80] sm:$0xf]  ;;  %v992_v24 = vor.u32 %v1191_v14, %v989_v15 }
  0x1f   : > { %498 = vmatpush.bf16.msra.mxu1 %v1004_v57  ;;  %511 = vmatpush.bf16.msra.mxu2 %v944_v58  ;;  %v1190_v22 = vld [vmem:[%s1734_s1 + $0x84] sm:$0xf0]  ;;  %v1173_v23 = vld [vmem:[%s1734_s1 + $0x4] sm:$0xf]  ;;  %v917_v25 = vld [vmem:[%s1734_s1 + $0x8] sm:$0xf0]  ;;  %v916_v30 = vor.u32 %v1174_v18, %v915_v17 }
  0x20   : > { %524 = vmatpush.bf16.msra.mxu3 %v1008_v62  ;;  %v1189_v26 = vld [vmem:[%s1734_s1 + $0x84] sm:$0xf]  ;;  %s1171_s26 = sshll.u32 %s1742_s25, 4  ;;  %v981_v27 = vld [vmem:[%s1734_s1 + $0x88] sm:$0xf0]  ;;  %v980_v34 = vor.u32 %v1190_v22, %v979_v21  ;;  %v920_v35 = vor.u32 %v1173_v23, %v917_v25 }
  0x21   : > { %s273_s8 = scalar_lea.vmem %s1733_s0, %s1171_s26  ;;  %v1099_v28 = vld [vmem:[%s1736_s3 + $0x70] sm:$0xf]  ;;  %v1220_v29 = vld [vmem:[%s1736_s3 + $0x74] sm:$0xf0]  ;;  %v1219_v32 = vld [vmem:[%s1736_s3 + $0x74] sm:$0xf]  ;;  %v984_v37 = vor.u32 %v1189_v26, %v981_v27  ;;  %s278_s30 = scalar_lea.vmem %s1740_s7, %s1171_s26 }
  0x22   : > { %486 = vmatpush.bf16.msra.mxu0 %v932_v4  ;;  %v1517_v31 = vld [vmem:[%s273_s8] sm:$0xff]  ;;  %v1101_v33 = vld [vmem:[%s1736_s3 + $0x78] sm:$0xf0]  ;;  %v1525_v36 = vld [vmem:[%s273_s8 + $0x8] sm:$0xff]  ;;  %v1100_v38 = vor.u32 %v1220_v29, %v1099_v28 }
  0x23   : > { %499 = vmatpush.bf16.msra.mxu1 %v996_v6  ;;  %512 = vmatpush.bf16.msra.mxu2 %v936_v7  ;;  %v1091_v39 = vld [vmem:[%s1736_s3 + $0x60] sm:$0xf]  ;;  %v1163_v40 = vld [vmem:[%s1736_s3 + $0xf0] sm:$0xf]  ;;  %v1236_v41 = vld [vmem:[%s1736_s3 + $0xf4] sm:$0xf0]  ;;  %v281_v42 = vpack.c.bf16 %v1517_v31, %v1517_v31  ;;  %v1104_v43 = vor.u32 %v1219_v32, %v1101_v33  ;;  %v282_v47 = vpack.c.bf16 %v1525_v36, %v1525_v36 }
  0x24   : > { %525 = vmatpush.bf16.msra.mxu3 %v1000_v11  ;;  %v1218_v44 = vld [vmem:[%s1736_s3 + $0x64] sm:$0xf0]  ;;  %v1235_v45 = vld [vmem:[%s1736_s3 + $0xf4] sm:$0xf]  ;;  %v1165_v46 = vld [vmem:[%s1736_s3 + $0xf8] sm:$0xf0]  ;;  %v1164_v50 = vor.u32 %v1236_v41, %v1163_v40 }
  0x25   : > { %v1217_v48 = vld [vmem:[%s1736_s3 + $0x64] sm:$0xf]  ;;  %v1093_v49 = vld [vmem:[%s1736_s3 + $0x68] sm:$0xf0]  ;;  %v1092_v51 = vor.u32 %v1218_v44, %v1091_v39  ;;  %v1168_v52 = vor.u32 %v1235_v45, %v1165_v46  ;;  %v1083_v53 = vld [vmem:[%s1736_s3 + $0x50] sm:$0xf] }
  0x26   : > { %487 = vmatpush.bf16.msra.mxu0 %v924_v16  ;;  %v1155_v54 = vld [vmem:[%s1736_s3 + $0xe0] sm:$0xf]  ;;  %v1234_v55 = vld [vmem:[%s1736_s3 + $0xe4] sm:$0xf0]  ;;  %v1096_v56 = vor.u32 %v1217_v48, %v1093_v49  ;;  %v1216_v57 = vld [vmem:[%s1736_s3 + $0x54] sm:$0xf0] }
  0x27   : > { %500 = vmatpush.bf16.msra.mxu1 %v988_v19  ;;  %513 = vmatpush.bf16.msra.mxu2 %v928_v20  ;;  %v1233_v58 = vld [vmem:[%s1736_s3 + $0xe4] sm:$0xf]  ;;  %v1157_v59 = vld [vmem:[%s1736_s3 + $0xe8] sm:$0xf0]  ;;  %v1215_v60 = vld [vmem:[%s1736_s3 + $0x54] sm:$0xf]  ;;  %v1156_v62 = vor.u32 %v1234_v55, %v1155_v54  ;;  %v1084_v0 = vor.u32 %v1216_v57, %v1083_v53 }
  0x28   : > { %526 = vmatpush.bf16.msra.mxu3 %v992_v24  ;;  %v1085_v61 = vld [vmem:[%s1736_s3 + $0x58] sm:$0xf0]  ;;  %v1075_v63 = vld [vmem:[%s1736_s3 + $0x40] sm:$0xf]  ;;  %v1160_v1 = vor.u32 %v1233_v58, %v1157_v59  ;;  %v1147_v2 = vld [vmem:[%s1736_s3 + $0xd0] sm:$0xf] }
  0x29   : > { %v1232_v3 = vld [vmem:[%s1736_s3 + $0xd4] sm:$0xf0]  ;;  %v1088_v4 = vor.u32 %v1215_v60, %v1085_v61  ;;  %v1214_v5 = vld [vmem:[%s1736_s3 + $0x44] sm:$0xf0]  ;;  %v1231_v6 = vld [vmem:[%s1736_s3 + $0xd4] sm:$0xf] }
  0x2a   : > { %488 = vmatpush.bf16.msra.mxu0 %v916_v30  ;;  %v1149_v7 = vld [vmem:[%s1736_s3 + $0xd8] sm:$0xf0]  ;;  %v1213_v8 = vld [vmem:[%s1736_s3 + $0x44] sm:$0xf]  ;;  %v1077_v9 = vld [vmem:[%s1736_s3 + $0x48] sm:$0xf0]  ;;  %v1148_v10 = vor.u32 %v1232_v3, %v1147_v2  ;;  %v1076_v11 = vor.u32 %v1214_v5, %v1075_v63 }
  0x2b   : > { %501 = vmatpush.bf16.msra.mxu1 %v980_v34  ;;  %514 = vmatpush.bf16.msra.mxu2 %v920_v35  ;;  %v1152_v12 = vor.u32 %v1231_v6, %v1149_v7  ;;  %v1067_v13 = vld [vmem:[%s1736_s3 + $0x30] sm:$0xf]  ;;  %v1139_v14 = vld [vmem:[%s1736_s3 + $0xc0] sm:$0xf]  ;;  %v1230_v15 = vld [vmem:[%s1736_s3 + $0xc4] sm:$0xf0]  ;;  %v1080_v16 = vor.u32 %v1213_v8, %v1077_v9 }
  0x2c   : > { %527 = vmatpush.bf16.msra.mxu3 %v984_v37  ;;  %v1212_v17 = vld [vmem:[%s1736_s3 + $0x34] sm:$0xf0]  ;;  %v1229_v18 = vld [vmem:[%s1736_s3 + $0xc4] sm:$0xf]  ;;  %v1141_v19 = vld [vmem:[%s1736_s3 + $0xc8] sm:$0xf0]  ;;  %v1140_v22 = vor.u32 %v1230_v15, %v1139_v14 }
  0x2d   : > { %489 = vmatmul.bf16.vlgmr.msra.gmra.mxu0 %v281_v42  ;;  %v1211_v20 = vld [vmem:[%s1736_s3 + $0x34] sm:$0xf]  ;;  %v1069_v21 = vld [vmem:[%s1736_s3 + $0x38] sm:$0xf0]  ;;  %v1068_v23 = vor.u32 %v1212_v17, %v1067_v13  ;;  %v1144_v24 = vor.u32 %v1229_v18, %v1141_v19  ;;  %v1059_v26 = vld [vmem:[%s1736_s3 + $0x20] sm:$0xf] }
  0x2e   : > { %735 = vmatpush.bf16.msrb.mxu0 %v1100_v38  ;;  %502 = vmatmul.bf16.vlgmr.msra.gmra.mxu1 %v282_v47  ;;  %v1072_v25 = vor.u32 %v1211_v20, %v1069_v21  ;;  %v1210_v27 = vld [vmem:[%s1736_s3 + $0x24] sm:$0xf0]  ;;  %v1209_v28 = vld [vmem:[%s1736_s3 + $0x24] sm:$0xf]  ;;  %v1061_v29 = vld [vmem:[%s1736_s3 + $0x28] sm:$0xf0] }
  0x2f   : > { %761 = vmatpush.bf16.msrb.mxu2 %v1104_v43  ;;  %528 = vmatmul.bf16.vlgmr.msra.gmra.mxu3 %v282_v47  ;;  %v1060_v30 = vor.u32 %v1210_v27, %v1059_v26  ;;  %v1064_v32 = vor.u32 %v1209_v28, %v1061_v29  ;;  %v1131_v33 = vld [vmem:[%s1736_s3 + $0xb0] sm:$0xf]  ;;  %v1228_v34 = vld [vmem:[%s1736_s3 + $0xb4] sm:$0xf0]  ;;  %v1227_v35 = vld [vmem:[%s1736_s3 + $0xb4] sm:$0xf] }
  0x30   : > { %515 = vmatmul.bf16.vlgmr.msra.gmra.mxu2 %v281_v42  ;;  %748 = vmatpush.bf16.msrb.mxu1 %v1164_v50  ;;  %v1132_v37 = vor.u32 %v1228_v34, %v1131_v33  ;;  %v1133_v38 = vld [vmem:[%s1736_s3 + $0xb8] sm:$0xf0]  ;;  %v1051_v40 = vld [vmem:[%s1736_s3 + $0x10] sm:$0xf]  ;;  %v1208_v41 = vld [vmem:[%s1736_s3 + $0x14] sm:$0xf0] }
  0x31   : > { %774 = vmatpush.bf16.msrb.mxu3 %v1168_v52  ;;  %v1136_v39 = vor.u32 %v1227_v35, %v1133_v38  ;;  %v1207_v42 = vld [vmem:[%s1736_s3 + $0x14] sm:$0xf]  ;;  %v1052_v43 = vor.u32 %v1208_v41, %v1051_v40  ;;  %v1053_v44 = vld [vmem:[%s1736_s3 + $0x18] sm:$0xf0]  ;;  %v1123_v46 = vld [vmem:[%s1736_s3 + $0xa0] sm:$0xf] }
  0x32   : > { %736 = vmatpush.bf16.msrb.mxu0 %v1092_v51  ;;  %v1056_v45 = vor.u32 %v1207_v42, %v1053_v44  ;;  %v1226_v47 = vld [vmem:[%s1736_s3 + $0xa4] sm:$0xf0]  ;;  %v1225_v48 = vld [vmem:[%s1736_s3 + $0xa4] sm:$0xf]  ;;  %v1125_v50 = vld [vmem:[%s1736_s3 + $0xa8] sm:$0xf0] }
  0x33   : > { %762 = vmatpush.bf16.msrb.mxu2 %v1096_v56  ;;  %v1124_v49 = vor.u32 %v1226_v47, %v1123_v46  ;;  %v1128_v51 = vor.u32 %v1225_v48, %v1125_v50  ;;  %v1043_v52 = vld [vmem:[%s1736_s3] sm:$0xf]  ;;  %v1206_v53 = vld [vmem:[%s1736_s3 + $0x4] sm:$0xf0]  ;;  %v1205_v54 = vld [vmem:[%s1736_s3 + $0x4] sm:$0xf] }
  0x34   : > { %749 = vmatpush.bf16.msrb.mxu1 %v1156_v62  ;;  %v1044_v55 = vor.u32 %v1206_v53, %v1043_v52  ;;  %v1045_v56 = vld [vmem:[%s1736_s3 + $0x8] sm:$0xf0]  ;;  %v1115_v58 = vld [vmem:[%s1736_s3 + $0x90] sm:$0xf]  ;;  %v1224_v59 = vld [vmem:[%s1736_s3 + $0x94] sm:$0xf0] }
  0x35   : > { %775 = vmatpush.bf16.msrb.mxu3 %v1160_v1  ;;  %v1048_v57 = vor.u32 %v1205_v54, %v1045_v56  ;;  %v1116_v60 = vor.u32 %v1224_v59, %v1115_v58  ;;  %v1223_v61 = vld [vmem:[%s1736_s3 + $0x94] sm:$0xf]  ;;  %v1117_v62 = vld [vmem:[%s1736_s3 + $0x98] sm:$0xf0]  ;;  %v1222_v1 = vld [vmem:[%s1736_s3 + $0x84] sm:$0xf0] }
  0x36   : > { %737 = vmatpush.bf16.msrb.mxu0 %v1084_v0  ;;  %v1120_v63 = vor.u32 %v1223_v61, %v1117_v62  ;;  %v1107_v0 = vld [vmem:[%s1736_s3 + $0x80] sm:$0xf]  ;;  %v1221_v2 = vld [vmem:[%s1736_s3 + $0x84] sm:$0xf] }
  0x37   : > { %763 = vmatpush.bf16.msrb.mxu2 %v1088_v4  ;;  %v1108_v3 = vor.u32 %v1222_v1, %v1107_v0  ;;  %v1109_v4 = vld [vmem:[%s1736_s3 + $0x88] sm:$0xf0]  ;;  %v315_v6 = vld [vmem:[%s1735_s2] sm:$0x3] }
  0x38   : > { %750 = vmatpush.bf16.msrb.mxu1 %v1148_v10  ;;  %v1112_v5 = vor.u32 %v1221_v2, %v1109_v4  ;;  %v317_v7 = vperm.slane %v315_v6, 0  ;;  %v1245_v4 = vld [vmem:[%s1738_s5] ss:$0 sm:$0xff] }
  0x39   : > { %776 = vmatpush.bf16.msrb.mxu3 %v1152_v12  ;;  %v318_v12 = vperm.slane %v315_v6, 1 }
  0x3a   : > { %738 = vmatpush.bf16.msrb.mxu0 %v1076_v11 }
  0x3b   : > { %764 = vmatpush.bf16.msrb.mxu2 %v1080_v16 }
  0x3c   : > { %751 = vmatpush.bf16.msrb.mxu1 %v1140_v22 }
  0x3d   : > { %777 = vmatpush.bf16.msrb.mxu3 %v1144_v24 }
  0x3e   : > { %739 = vmatpush.bf16.msrb.mxu0 %v1068_v23 }
  0x3f   : > { %765 = vmatpush.bf16.msrb.mxu2 %v1072_v25  ;;  %v569_v25 = vld [vmem:[%s1737_s4] sm:$0x3] }
  0x40   : > { %752 = vmatpush.bf16.msrb.mxu1 %v1132_v37  ;;  %v571_v26 = vperm.slane %v569_v25, 0  ;;  %v572_v29 = vperm.slane %v569_v25, 1 }
  0x41   : > { %778 = vmatpush.bf16.msrb.mxu3 %v1136_v39 }
  0x42   : > { %740 = vmatpush.bf16.msrb.mxu0 %v1060_v30 }
  0x43   : > { %766 = vmatpush.bf16.msrb.mxu2 %v1064_v32 }
  0x44   : > { %753 = vmatpush.bf16.msrb.mxu1 %v1124_v49 }
  0x45   : > { %779 = vmatpush.bf16.msrb.mxu3 %v1128_v51 }
  0x46   : > { %741 = vmatpush.bf16.msrb.mxu0 %v1052_v43 }
  0x47   : > { %767 = vmatpush.bf16.msrb.mxu2 %v1056_v45 }
  0x48   : > { %754 = vmatpush.bf16.msrb.mxu1 %v1116_v60 }
  0x49   : > { %780 = vmatpush.bf16.msrb.mxu3 %v1120_v63 }
  0x4a   : > { %742 = vmatpush.bf16.msrb.mxu0 %v1044_v55 }
  0x4b   : > { %768 = vmatpush.bf16.msrb.mxu2 %v1048_v57 }
  0x4c   : > { %755 = vmatpush.bf16.msrb.mxu1 %v1108_v3 }
  0x4d   : > { %781 = vmatpush.bf16.msrb.mxu3 %v1112_v5 }
  0xaa   : > { %v490_v8 = vpop.f32.mrf.mxu0 }
  0xab   : > { %v491_v9 = vadd.f32 %v490_v8, %v317_v7  ;;  %v503_v10 = vpop.f32.mrf.mxu1  ;;  %v1246_v7 = vld [vmem:[%s1739_s6] ss:$0 sm:$0xff] }
  0xad   : > { %v504_v11 = vadd.f32 %v503_v10, %v491_v9 }
  0xaf   : > { %v533_v13 = vmax.f32 %v504_v11, 0.0 }
  0xb1   : > { %v535_v14 = vpack.c.bf16 %v533_v13, %v533_v13 }
  0xb2   : > { %v529_v17 = vpop.f32.mrf.mxu3  ;;  %v492_v18 = vpop.f32.mrf.mxu0 }
  0xb3   : > { %v516_v15 = vpop.f32.mrf.mxu2  ;;  %v505_v19 = vpop.f32.mrf.mxu1  ;;  %743 = vmatmul.bf16.vlgmr.msrb.gmra.mxu0 %v535_v14  ;;  %769 = vmatmul.bf16.vlgmr.msrb.gmra.mxu2 %v535_v14 }
  0xb4   : > { %v517_v16 = vadd.f32 %v516_v15, %v318_v12 }
  0xb6   : > { %v530_v20 = vadd.f32 %v529_v17, %v517_v16 }
  0xb8   : > { %v534_v21 = vmax.f32 %v530_v20, 0.0 }
  0xba   : > { %v536_v22 = vpack.c.bf16 %v534_v21, %v534_v21  ;;  %v531_v24 = vpop.f32.mrf.mxu3 }
  0xbb   : > { %v518_v23 = vpop.f32.mrf.mxu2 }
  0xbc   : > { %756 = vmatmul.bf16.vlgmr.msrb.gmra.mxu1 %v536_v22  ;;  %782 = vmatmul.bf16.vlgmr.msrb.gmra.mxu3 %v536_v22 }
 0x130   : > { %v744_v27 = vpop.f32.mrf.mxu0 }
 0x131   : > { %v745_v28 = vadd.f32 %v744_v27, %v571_v26 }
 0x136   : > { %v770_v30 = vpop.f32.mrf.mxu2 }
 0x137   : > { %v771_v37 = vadd.f32 %v770_v30, %v572_v29 }
 0x138   : > { %v746_v34 = vpop.f32.mrf.mxu0 }
 0x139   : > { %v757_v32 = vpop.f32.mrf.mxu1 }
 0x13a   : > { %v758_v33 = vadd.f32 %v757_v32, %v745_v28 }
 0x13c   : > { %v787_v35 = vadd.f32 %v758_v33, %v1517_v31 }
 0x13e   : > { %791 = vadd.xlane.f32.xlu0 %v787_v35  ;;  %v794_v38 = vmul.f32 %v787_v35, %v787_v35  ;;  %v772_v41 = vpop.f32.mrf.mxu2 }
 0x13f   : > { %v783_v39 = vpop.f32.mrf.mxu3 }
 0x140   : > { %v784_v40 = vadd.f32 %v783_v39, %v771_v37  ;;  %795 = vadd.xlane.f32.xlu1 %v794_v38 }
 0x141   : > { %v759_v42 = vpop.f32.mrf.mxu1 }
 0x142   : > { %v788_v43 = vadd.f32 %v784_v40, %v1525_v36 }
 0x144   : > { %v826_v44 = vmul.f32 %v788_v43, %v788_v43 }
 0x146   : > { %823 = vadd.xlane.f32.xlu0 %v788_v43 }
 0x147   : > { %v785_v45 = vpop.f32.mrf.mxu3 }
 0x148   : > { %827 = vadd.xlane.f32.xlu1 %v826_v44 }
 0x1b1   : > { %v792_v46 = vpop.xlane.xlu0 %791 }
 0x1b2   : > { %v793_v47 = vmul.f32 0.03125, %v792_v46 }
 0x1b3   : > { %v796_v48 = vpop.xlane.xlu1 %795 }
 0x1b4   : > { %v798_v49 = vmul.f32 %v793_v47, %v793_v47  ;;  %v797_v50 = vmul.f32 0.03125, %v796_v48  ;;  %v801_v3 = vsub.f32 %v787_v35, %v793_v47 }
 0x1b6   : > { %v799_v31 = vsub.f32 %v797_v50, %v798_v49 }
 0x1b8   : > { %v800_v51 = vmax.f32 %v799_v31, 0.0 }
 0x1b9   : > { %v824_v52 = vpop.xlane.xlu0 %823 }
 0x1ba   : > { %v802_v53 = vadd.f32 1e-05, %v800_v51  ;;  %v825_v54 = vmul.f32 0.03125, %v824_v52 }
 0x1bb   : > { %v828_v55 = vpop.xlane.xlu1 %827 }
 0x1bc   : > { %1247 = vrsqrt.f32 %v802_v53  ;;  %v830_v56 = vmul.f32 %v825_v54, %v825_v54  ;;  %v829_v57 = vmul.f32 0.03125, %v828_v55  ;;  %vm809_vm1 = vweird.f32 %v802_v53 }
 0x1bd   : > { %v833_v15 = vsub.f32 %v788_v43, %v825_v54 }
 0x1be   : > { %v831_v58 = vsub.f32 %v829_v57, %v830_v56 }
 0x1c0   : > { %v832_v36 = vmax.f32 %v831_v58, 0.0 }
 0x1c2   : > { %v1248_v59 = vpop.eup %1247  ;;  %v834_v61 = vadd.f32 1e-05, %v832_v36 }
 0x1c3   : > { %v804_v60 = vmul.f32 %v1248_v59, %v802_v53  ;;  %vm810_vm0 = vweird.f32 %v1248_v59 }
 0x1c4   : > { %1249 = vrsqrt.f32 %v834_v61  ;;  %vm811_vm2 = vmor %vm809_vm1, %vm810_vm0  ;;  %vm841_vm4 = vweird.f32 %v834_v61 }
 0x1c5   : > { %v805_v62 = vmul.f32 %v1248_v59, %v804_v60 }
 0x1c7   : > { %v806_v63 = vmul.f32 0.5, %v805_v62 }
 0x1c9   : > { %v807_v0 = vsub.f32 1.5, %v806_v63 }
 0x1ca   : > { %v1250_v1 = vpop.eup %1249 }
 0x1cb   : > { %v808_v2 = vmul.f32 %v1248_v59, %v807_v0  ;;  %v836_v5 = vmul.f32 %v1250_v1, %v834_v61  ;;  %vm842_vm3 = vweird.f32 %v1250_v1 }
 0x1cc   : > { %vm843_vm5 = vmor %vm841_vm4, %vm842_vm3 }
 0x1cd   : > { %v812_v6 = vsel %vm811_vm2, %v1248_v59, %v808_v2  ;;  %v837_v9 = vmul.f32 %v1250_v1, %v836_v5 }
 0x1ce   : > { %v813_v8 = vmul.f32 %v812_v6, %v801_v3 }
 0x1cf   : > { %v838_v11 = vmul.f32 0.5, %v837_v9 }
 0x1d0   : > { %v817_v10 = vmul.f32 %v1245_v4, %v813_v8 }
 0x1d1   : > { %v839_v13 = vsub.f32 1.5, %v838_v11 }
 0x1d2   : > { %v821_v12 = vadd.f32 %v1246_v7, %v817_v10 }
 0x1d3   : > { %v840_v14 = vmul.f32 %v1250_v1, %v839_v13 }
 0x1d4   : > { %822 = vst [vmem:[%s278_s30] sm:$0xff] %v821_v12 }
 0x1d5   : > { %v844_v16 = vsel %vm843_vm5, %v1250_v1, %v840_v14 }
 0x1d6   : > { %v845_v17 = vmul.f32 %v844_v16, %v833_v15 }
 0x1d8   : > { %v846_v18 = vmul.f32 %v1245_v4, %v845_v17 }
 0x1da   : > { %v847_v19 = vadd.f32 %v1246_v7, %v846_v18 }
 0x1dc   : > { %848 = vst [vmem:[%s278_s30 + $0x8] sm:$0xff] %v847_v19 }
 0x1dd PF: > { %s17_s24 = sadd.s32 1, %s1257_s24  }
 0x1de   : > { %p14_p4 = scmp.ge.s32.totalorder %s17_s24, 4  }
 0x1e0   :  { %16 = sbr.rel (!%p14_p4) target bundleno = 1 (0x1), region = 78 }

</bundles_post_ra>
